<compile_context>
chip_gen: v7x
topology: tpu7x:2x2x1
jax: 0.10.0
libtpu: 0.0.40
codegen_flags: <defaults>
</compile_context>

<pallas_src>
import functools

import jax
import jax.numpy as jnp
from jax import lax
from jax.experimental import pallas as pl
from jax.experimental.pallas import tpu as pltpu


def _round_up(x, m):
    return (x + m - 1) // m * m


# ---------------------------------------------------------------------------
# Kernels (one grid step = one batch tile of TB rows -> one f32 partial sum)
# ---------------------------------------------------------------------------
def _euclid_kernel(o1_ref, o2_ref, t_ref, loss_ref, *, margin, batch_size, block_rows):
    i = pl.program_id(0)

    @pl.when(i == 0)
    def _init():
        loss_ref[...] = jnp.zeros_like(loss_ref)

    o1 = o1_ref[...].astype(jnp.float32)                  # (TB, D)
    o2 = o2_ref[...].astype(jnp.float32)                  # (TB, D)
    t = t_ref[...].astype(jnp.float32)                    # (TB, 1)

    d = o2 - o1
    dist = jnp.sum(d * d, axis=1, keepdims=True)          # (TB, 1) lane reduce (XLU)
    hinge = jnp.maximum(margin - jnp.sqrt(dist + 1e-09), 0.0)
    losses = 0.5 * (t * dist + (1.0 - t) * hinge * hinge)

    # Mask remainder rows of the last (partial) tile, then reduce to a scalar.
    row = i * block_rows + lax.broadcasted_iota(jnp.int32, losses.shape, 0)
    masked = jnp.where(row < batch_size, losses, 0.0)
    loss_ref[...] += jnp.sum(masked, keepdims=True)       # (1, 1) accumulate

    @pl.when(i == pl.num_programs(0) - 1)
    def _final():
        loss_ref[...] = loss_ref[...] * (1.0 / batch_size)


def _cosine_kernel(o1_ref, o2_ref, t_ref, loss_ref, *, margin, batch_size, block_rows):
    eps = 1e-08                                           # torch CosineSimilarity eps
    i = pl.program_id(0)

    @pl.when(i == 0)
    def _init():
        loss_ref[...] = jnp.zeros_like(loss_ref)

    o1 = o1_ref[...].astype(jnp.float32)                  # (TB, D)
    o2 = o2_ref[...].astype(jnp.float32)                  # (TB, D)
    t = t_ref[...].astype(jnp.float32)                    # (TB, 1)

    dot = jnp.sum(o1 * o2, axis=1, keepdims=True)         # (TB, 1)
    ss1 = jnp.sum(o1 * o1, axis=1, keepdims=True)
    ss2 = jnp.sum(o2 * o2, axis=1, keepdims=True)
    # Per-factor rsqrt (EUP slot, essentially free) avoids f32 overflow of ss1*ss2.
    inv = lax.rsqrt(jnp.maximum(ss1, eps * eps)) * lax.rsqrt(jnp.maximum(ss2, eps * eps))
    cosine = dot * inv

    losses = t * (1.0 - cosine) + (1.0 - t) * jnp.maximum(cosine - margin, 0.0)

    row = i * block_rows + lax.broadcasted_iota(jnp.int32, losses.shape, 0)
    masked = jnp.where(row < batch_size, losses, 0.0)
    loss_ref[...] += jnp.sum(masked, keepdims=True)       # (1, 1) accumulate

    @pl.when(i == pl.num_programs(0) - 1)
    def _final():
        loss_ref[...] = loss_ref[...] * (1.0 / batch_size)


# ---------------------------------------------------------------------------
# Tiling / VMEM budgeting
# ---------------------------------------------------------------------------
def _vmem_limit_bytes():
    """Per-generation scoped-VMEM limit: ~3/4 of physical, capped at 96 MiB.
    v5e/v6e (128 MiB physical) -> 96 MiB; v7x (64 MiB per TC) -> 48 MiB."""
    try:
        cap = int(pltpu.get_tpu_info().vmem_capacity_bytes)
    except Exception:
        cap = 64 * 1024 * 1024   # conservative fallback (v7x-sized)
    return min(96 * 1024 * 1024, (cap * 3) // 4)


def _choose_block_rows(B, D, vmem_limit):
    """Pick the batch tile TB.

    Budget each (TB, D) block at f32 width (4 B/elem) because the in-kernel
    widening materializes f32 temporaries regardless of the input dtype:
    2 inputs x 2 pipeline buffers + ~4 live f32 temporaries ~= 8-10 blocks,
    so one block gets ~vmem_limit/16.  Additionally cap TB so the grid has
    >= ~8 steps, which is what lets the auto double-buffer overlap DMA with
    compute (and amortizes the ~0.35us/step grid overhead without serializing).
    """
    if B <= 8:
        return B                                    # full-extent block is always legal
    block_budget = max(64 * 1024, vmem_limit // 16)
    tb_budget = max(8, (block_budget // max(1, D * 4)) // 8 * 8)
    tb_overlap = max(8, _round_up(pl.cdiv(B, 8), 8))    # aim for >= ~8 grid steps
    tb = min(tb_budget, tb_overlap, _round_up(B, 8))
    if tb >= B:
        tb = B
    return tb


# ---------------------------------------------------------------------------
# Wrapper
# ---------------------------------------------------------------------------
def contrastive_loss(output1, output2, target, *, margin, mode="euclid",
                     block_rows=None):
    """output1/output2: (B, D) float; target: (B,) {0,1}. Returns scalar f32."""
    B, D = output1.shape
    t2 = target.reshape(B, 1)

    vmem_limit = _vmem_limit_bytes()
    if block_rows is not None:
        # Validate user tile: multiple of 8 (sublane constraint) or the full batch.
        tb = max(8, _round_up(int(block_rows), 8))
        if tb >= B:
            tb = B
    else:
        tb = _choose_block_rows(B, D, vmem_limit)
    num_tiles = pl.cdiv(B, tb)

    if mode == "euclid":
        kernel = functools.partial(_euclid_kernel, margin=float(margin),
                                   batch_size=B, block_rows=tb)
    elif mode == "cosine":
        kernel = functools.partial(_cosine_kernel, margin=float(margin),
                                   batch_size=B, block_rows=tb)
    else:
        raise Exception("`mode` has invalid value")

    out = pl.pallas_call(
        kernel,
        out_shape=jax.ShapeDtypeStruct((1, 1), jnp.float32),
        grid_spec=pltpu.PrefetchScalarGridSpec(
            num_scalar_prefetch=0,
            grid=(num_tiles,),
            in_specs=[
                pl.BlockSpec((tb, D), lambda i: (i, 0)),
                pl.BlockSpec((tb, D), lambda i: (i, 0)),
                pl.BlockSpec((tb, 1), lambda i: (i, 0)),
            ],
            # Single resident accumulator block across the (reduction) grid axis.
            out_specs=pl.BlockSpec((1, 1), lambda i: (0, 0)),
        ),
        compiler_params=pltpu.CompilerParams(
            dimension_semantics=("arbitrary",),
            vmem_limit_bytes=vmem_limit,
        ),
    )(output1, output2, t2)

    return out[0, 0]


# ---------------------------------------------------------------------------
# Pure-JAX reference for sanity checking.
# ---------------------------------------------------------------------------
def _reference(output1, output2, target, *, margin, mode="euclid"):
    o1 = output1.astype(jnp.float32)
    o2 = output2.astype(jnp.float32)
    t = target.astype(jnp.float32)
    if mode == "euclid":
        eps = 1e-09
        distances = jnp.sum((o2 - o1) ** 2, axis=1)
        hinge = jnp.maximum(margin - jnp.sqrt(distances + eps), 0.0)
        losses = 0.5 * (t * distances + (1.0 - t) * hinge ** 2)
        return jnp.mean(losses)
    else:
        eps = 1e-08
        dot = jnp.sum(o1 * o2, axis=1)
        n1 = jnp.maximum(jnp.linalg.norm(o1, axis=1), eps)
        n2 = jnp.maximum(jnp.linalg.norm(o2, axis=1), eps)
        cosine = dot / (n1 * n2)
        loss = t * (1.0 - cosine) + (1.0 - t) * jnp.maximum(cosine - margin, 0.0)
        return jnp.sum(loss) / o1.shape[0]


if __name__ == "__main__":
    key = jax.random.PRNGKey(0)
    margin = 1.0
    ok = True

    def _check(name, o1, o2, tgt, mode, **kw):
        global ok
        loss = jax.block_until_ready(
            contrastive_loss(o1, o2, tgt, margin=margin, mode=mode, **kw))
        ref = _reference(o1, o2, tgt, margin=margin, mode=mode)
        if not jnp.allclose(loss, ref, atol=1e-5, rtol=1e-5):
            ok = False
            print(f"{name} mode={mode}: pallas={loss} ref={ref} MISMATCH")

    # Case 1: small batch, single full-extent tile.
    k1, k2, k3 = jax.random.split(key, 3)
    B, D = 8, 32
    o1a = jax.random.normal(k1, (B, D), dtype=jnp.float32)
    o2a = jax.random.normal(k2, (B, D), dtype=jnp.float32)
    ta = jax.random.bernoulli(k3, 0.5, (B,)).astype(jnp.int32)
    for mode in ("euclid", "cosine"):
        _check("case1", o1a, o2a, ta, mode)

    # Case 2: batch not a multiple of the tile -> multi-tile grid, remainder
    # masking, in-kernel accumulation across tiles (forced small block_rows).
    k4, k5, k6 = jax.random.split(jax.random.PRNGKey(0), 3)
    B2, D2 = 20, 32
    o1b = jax.random.normal(k4, (B2, D2), dtype=jnp.float32)
    o2b = jax.random.normal(k5, (B2, D2), dtype=jnp.float32)
    tb_ = jax.random.bernoulli(k6, 0.5, (B2,)).astype(jnp.int32)
    for mode in ("euclid", "cosine"):
        _check("case2", o1b, o2b, tb_, mode, block_rows=8)

    # Case 3: automatic tile selection, multi-tile grid, bf16 streaming.
    k7, k8, k9 = jax.random.split(jax.random.PRNGKey(1), 3)
    B3, D3 = 96, 64
    o1c = jax.random.normal(k7, (B3, D3), dtype=jnp.bfloat16)
    o2c = jax.random.normal(k8, (B3, D3), dtype=jnp.bfloat16)
    tc_ = jax.random.bernoulli(k9, 0.5, (B3,)).astype(jnp.int32)
    for mode in ("euclid", "cosine"):
        _check("case3", o1c, o2c, tc_, mode)

    if ok:
        print("KERNEL_OK")
</pallas_src>

<mosaic_0001>
module attributes {stable_mosaic.version = 11 : i64} {
  func.func @_euclid_kernel(%arg0: i32, %arg1: memref<8x32xf32, #tpu.memory_space<vmem>>, %arg2: memref<8x32xf32, #tpu.memory_space<vmem>>, %arg3: memref<8x1xi32, #tpu.memory_space<vmem>>, %arg4: memref<1x1xf32, #tpu.memory_space<vmem>>) attributes {dimension_semantics = [#tpu.dimension_semantics<arbitrary>], iteration_bounds = array<i64: 1>, scalar_prefetch = 0 : i64, scratch_operands = 0 : i64, tpu.core_type = #tpu.core_type<tc>, window_params = [{transform_indices = @transform_0, window_bounds = array<i64: 8, 32>}, {transform_indices = @transform_1, window_bounds = array<i64: 8, 32>}, {transform_indices = @transform_2, window_bounds = array<i64: 8, 1>}, {pipeline_mode = #tpu.pipeline_mode<synchronous>, transform_indices = @transform_3, window_bounds = array<i64: 1, 1>}]} {
    %c0_i32 = arith.constant 0 : i32
    %0 = arith.cmpi eq, %arg0, %c0_i32 : i32
    %1 = arith.extui %0 : i1 to i32
    %c0_i32_0 = arith.constant 0 : i32
    %2 = arith.cmpi ne, %1, %c0_i32_0 : i32
    scf.if %2 {
      %cst_20 = arith.constant 0.000000e+00 : f32
      %45 = vector.broadcast %cst_20 : f32 to vector<1x1xf32>
      %c0_21 = arith.constant 0 : index
      %c0_22 = arith.constant 0 : index
      %46 = vector.load %arg4[%c0_21, %c0_22] : memref<1x1xf32, #tpu.memory_space<vmem>>, vector<1x1xf32>
      tpu.vector_store %arg4[%c0_21, %c0_22], %45 {strides = array<i32>} : memref<1x1xf32, #tpu.memory_space<vmem>>, vector<1x1xf32>,
    } else {
    }
    %c0 = arith.constant 0 : index
    %c0_1 = arith.constant 0 : index
    %3 = vector.load %arg1[%c0, %c0_1] : memref<8x32xf32, #tpu.memory_space<vmem>>, vector<8x32xf32>
    %c0_2 = arith.constant 0 : index
    %c0_3 = arith.constant 0 : index
    %4 = vector.load %arg2[%c0_2, %c0_3] : memref<8x32xf32, #tpu.memory_space<vmem>>, vector<8x32xf32>
    %c0_4 = arith.constant 0 : index
    %c0_5 = arith.constant 0 : index
    %5 = vector.load %arg3[%c0_4, %c0_5] : memref<8x1xi32, #tpu.memory_space<vmem>>, vector<8x1xi32>
    %6 = arith.sitofp %5 : vector<8x1xi32> to vector<8x1xf32>
    %7 = arith.subf %4, %3 : vector<8x32xf32>
    %8 = arith.mulf %7, %7 : vector<8x32xf32>
    %cst = arith.constant dense<0.000000e+00> : vector<8xf32>
    %9 = vector.multi_reduction <add>, %8, %cst [1] : vector<8x32xf32> to vector<8xf32>
    %10 = vector.shape_cast %9 : vector<8xf32> to vector<8x1xf32>
    %cst_6 = arith.constant 9.99999971E-10 : f32
    %11 = vector.broadcast %cst_6 : f32 to vector<8x1xf32>
    %12 = arith.addf %10, %11 : vector<8x1xf32>
    %13 = math.sqrt %12 : vector<8x1xf32>
    %cst_7 = arith.constant 1.000000e+00 : f32
    %14 = vector.broadcast %cst_7 : f32 to vector<8x1xf32>
    %15 = arith.subf %14, %13 : vector<8x1xf32>
    %cst_8 = arith.constant 0.000000e+00 : f32
    %16 = vector.broadcast %cst_8 : f32 to vector<8x1xf32>
    %17 = arith.maximumf %15, %16 : vector<8x1xf32>
    %18 = arith.mulf %6, %10 : vector<8x1xf32>
    %cst_9 = arith.constant 1.000000e+00 : f32
    %19 = vector.broadcast %cst_9 : f32 to vector<8x1xf32>
    %20 = arith.subf %19, %6 : vector<8x1xf32>
    %21 = arith.mulf %20, %17 : vector<8x1xf32>
    %22 = arith.mulf %21, %17 : vector<8x1xf32>
    %23 = arith.addf %18, %22 : vector<8x1xf32>
    %cst_10 = arith.constant 5.000000e-01 : f32
    %24 = vector.broadcast %cst_10 : f32 to vector<8x1xf32>
    %25 = arith.mulf %24, %23 : vector<8x1xf32>
    %c8_i32 = arith.constant 8 : i32
    %26 = arith.muli %arg0, %c8_i32 : i32
    %27 = tpu.iota {dimensions = array<i32: 0>} : vector<8x1xi32>
    %28 = vector.broadcast %26 : i32 to vector<8x1xi32>
    %29 = arith.addi %28, %27 : vector<8x1xi32>
    %c8_i32_11 = arith.constant 8 : i32
    %30 = vector.broadcast %c8_i32_11 : i32 to vector<8x1xi32>
    %31 = arith.cmpi slt, %29, %30 : vector<8x1xi32>
    %cst_12 = arith.constant 0.000000e+00 : f32
    %32 = vector.broadcast %cst_12 : f32 to vector<8x1xf32>
    %33 = arith.select %31, %25, %32 : vector<8x1xi1>, vector<8x1xf32>
    %c0_13 = arith.constant 0 : index
    %c0_14 = arith.constant 0 : index
    %34 = vector.load %arg4[%c0_13, %c0_14] : memref<1x1xf32, #tpu.memory_space<vmem>>, vector<1x1xf32>
    %35 = vector.shape_cast %33 : vector<8x1xf32> to vector<1x8x1xf32>
    %cst_15 = arith.constant dense<0.000000e+00> : vector<1xf32>
    %36 = vector.multi_reduction <add>, %35, %cst_15 [1, 2] : vector<1x8x1xf32> to vector<1xf32>
    %37 = vector.shape_cast %36 : vector<1xf32> to vector<1x1x1xf32>
    %38 = vector.extract %37[0, 0, 0] : f32 from vector<1x1x1xf32>
    %39 = vector.broadcast %38 : f32 to vector<1x1xf32>
    %40 = arith.addf %34, %39 : vector<1x1xf32>
    %c0_16 = arith.constant 0 : index
    %c0_17 = arith.constant 0 : index
    %41 = vector.load %arg4[%c0_16, %c0_17] : memref<1x1xf32, #tpu.memory_space<vmem>>, vector<1x1xf32>
    tpu.vector_store %arg4[%c0_16, %c0_17], %40 {strides = array<i32>} : memref<1x1xf32, #tpu.memory_space<vmem>>, vector<1x1xf32>,
    %c0_i32_18 = arith.constant 0 : i32
    %42 = arith.cmpi eq, %arg0, %c0_i32_18 : i32
    %43 = arith.extui %42 : i1 to i32
    %c0_i32_19 = arith.constant 0 : i32
    %44 = arith.cmpi ne, %43, %c0_i32_19 : i32
    scf.if %44 {
      %c0_20 = arith.constant 0 : index
      %c0_21 = arith.constant 0 : index
      %45 = vector.load %arg4[%c0_20, %c0_21] : memref<1x1xf32, #tpu.memory_space<vmem>>, vector<1x1xf32>
      %cst_22 = arith.constant 1.250000e-01 : f32
      %46 = vector.broadcast %cst_22 : f32 to vector<1x1xf32>
      %47 = arith.mulf %45, %46 : vector<1x1xf32>
      %c0_23 = arith.constant 0 : index
      %c0_24 = arith.constant 0 : index
      %48 = vector.load %arg4[%c0_23, %c0_24] : memref<1x1xf32, #tpu.memory_space<vmem>>, vector<1x1xf32>
      tpu.vector_store %arg4[%c0_23, %c0_24], %47 {strides = array<i32>} : memref<1x1xf32, #tpu.memory_space<vmem>>, vector<1x1xf32>,
    } else {
    }
    return
  }
  func.func @transform_0(%arg0: i32) -> (i32, i32) {
    %c0_i32 = arith.constant 0 : i32
    %c0_i32_0 = arith.constant 0 : i32
    return %arg0, %c0_i32 : i32, i32
  }
  func.func @transform_1(%arg0: i32) -> (i32, i32) {
    %c0_i32 = arith.constant 0 : i32
    %c0_i32_0 = arith.constant 0 : i32
    return %arg0, %c0_i32 : i32, i32
  }
  func.func @transform_2(%arg0: i32) -> (i32, i32) {
    %c0_i32 = arith.constant 0 : i32
    %c0_i32_0 = arith.constant 0 : i32
    return %arg0, %c0_i32 : i32, i32
  }
  func.func @transform_3(%arg0: i32) -> (i32, i32) {
    %c0_i32 = arith.constant 0 : i32
    %c0_i32_0 = arith.constant 0 : i32
    %c0_i32_1 = arith.constant 0 : i32
    return %c0_i32, %c0_i32_0 : i32, i32
  }
}

</mosaic_0001>

<bundles_post_ra>
// kernel: tpu_custom_call.1
= control target key start
LH: loop header
LB: loop body
LE: loop exit
PB: predicated region body
PF: predicated region fallthrough
CT: control target
= control target key end

     0   :  { %8 = vsyncpa [#allocation3], 0  ;;  %s214_s0 = inlined_call_operand.vmem [shape: f32[8,32], index: 0, kind: input, shape index: {}]   ;;  %s215_s1 = inlined_call_operand.hbm [shape: f32[8,32], index: 1, kind: input, shape index: {}]   ;;  %s216_s2 = inlined_call_operand.vmem [shape: s32[8,1], index: 2, kind: input, shape index: {}]   ;;  %s217_s3 = inlined_call_operand.hbm [shape: f32[1,1], index: 3, kind: output, shape index: {}]  }
   0x1   :  { %9 = vsyncpa [#allocation4], 0  ;;  %s158_s12 = smov [#allocation2]   ;;  %s110_s16 = scalar_lea.hbm %s215_s1, 128 }
   0x2   :  { %s18_s13 = sshll.u32 %s158_s12, 4  ;;  %p111_p0 = scmp.ne.s32.totalorder %s215_s1, %s110_s16  ;;  %s19_s13 = int_to_ptr.vmem [resolvable:$true] %s18_s13 }
   0x3   :  { %p114_p1 = scmp.lt.u32.totalorder %s110_s16, %s215_s1 }
   0x5   :  { %p116_p2 = pnand %p114_p1, %p111_p0 }
   0x7   :  { %119 = shalt.err (!%p116_p2)
}
   0x8   :  { %s120_s21 = scalar_lea.vmem %s19_s13, 128  ;;  %p125_p4 = scmp.lt.s32.totalorder %s19_s13, %s19_s13 }
   0x9   :  { %p121_p3 = scmp.ne.s32.totalorder %s19_s13, %s120_s21  ;;  %p126_p5 = scmp.lt.s32.totalorder %s120_s21, %s120_s21 }
   0xb   :  { %p127_p6 = por %p126_p5, %p125_p4 }
   0xd   :  { %p128_p7 = pnand %p127_p6, %p121_p3 }
   0xf   :  { %131 = shalt.err (!%p128_p7)
}
  0x10   :  { %21 = dma.hbm_to_vmem [thread:$0]  %s215_s1, 128, %s19_s13, [#allocation3]  }
  0x11   :  { %154 = dma.done.wait [#allocation3], 128  }
  0x12   :  { %155 = vsyncadd [#allocation3], 4294967168  ;;  %v33_v0 = vld [vmem:[%s214_s0] sm:$0xff]  ;;  %vm39_vm0 = vcmask 261120   ;;  %vm67_vm3 = vcmask 7168   ;;  %vm31_vm4 = vcmask 0  }
  0x13   :  { %v34_v1 = vld [vmem:[#allocation2] sm:$0xff]  ;;  %v159_v23 = vmov 0.0   ;;  %s160_s1 = smov [#allocation5]  }
  0x14   :  { %v37_v2 = vsub.f32 %v34_v1, %v33_v0  ;;  %v35_v8 = vld [vmem:[%s216_s2] sm:$0xff]  ;;  %32 = vst.msk [vmem:[#allocation5] sm:$0x1] %vm31_vm4, %v159_v23  ;;  %s94_s2 = sshll.u32 %s160_s1, 4  ;;  %s95_s2 = int_to_ptr.vmem [resolvable:$true] %s94_s2 }
  0x15   :  { %v36_v11 = vcvt.s32.f32 %v35_v8  ;;  %s132_s28 = scalar_lea.vmem %s95_s2, 16  ;;  %s136_s29 = scalar_lea.vmem %s95_s2, 32 }
  0x16   :  { %v38_v3 = vmul.f32 %v37_v2, %v37_v2  ;;  %p133_p8 = scmp.ne.s32.totalorder %s95_s2, %s132_s28  ;;  %p137_p9 = scmp.lt.s32.totalorder %s95_s2, %s95_s2 }
  0x17   :  { %v54_v14 = vsub.f32 1.0, %v36_v11  ;;  %p138_p10 = scmp.lt.s32.totalorder %s136_s29, %s132_s28 }
  0x18   :  { %v40_v4 = vsel %vm39_vm0, %v38_v3, 0.0 }
  0x19   :  { %41 = vadd.xlane.f32.xlu0 %v40_v4  ;;  %p139_p11 = por %p138_p10, %p137_p9 }
  0x1b   :  { %v66_v31 = vld [vmem:[#allocation5] sm:$0x1]  ;;  %p140_p12 = pnand %p139_p11, %p133_p8 }
  0xa6   :  { %v42_v5 = vpop.xlane.xlu0 %41 }
  0xa7   :  { %v43_v6 = vadd.f32 1e-09, %v42_v5  ;;  %v53_v18 = vmul.f32 %v42_v5, %v36_v11 }
  0xa9   :  { %108 = vrsqrt.f32 %v43_v6  ;;  %vm46_vm1 = vcmp.eq.f32.partialorder %v43_v6, inf  ;;  %v49_v10 = vand.u32 2147483648, %v43_v6  ;;  %vm48_vm2 = vcmp.eq.f32.partialorder %v43_v6, 0.0 }
  0xb3   :  { %v109_v7 = vpop.eup %108 }
  0xb4   :  { %v45_v9 = vmul.f32 %v109_v7, %v43_v6 }
  0xb6   :  { %v47_v12 = vsel %vm46_vm1, %v43_v6, %v45_v9 }
  0xb7   :  { %v50_v13 = vsel %vm48_vm2, %v49_v10, %v47_v12 }
  0xb8   :  { %v51_v15 = vsub.f32 1.0, %v50_v13 }
  0xba   :  { %v52_v16 = vmax.f32 %v51_v15, 0.0 }
  0xbc   :  { %v55_v17 = vmul.f32 %v54_v14, %v52_v16 }
  0xbe   :  { %v56_v19 = vmul.f32 %v55_v17, %v52_v16 }
  0xc0   :  { %v57_v20 = vadd.f32 %v56_v19, %v53_v18 }
  0xc2   :  { %v58_v21 = vmul.f32 0.5, %v57_v20 }
  0xc4   :  { %v68_v22 = vsel %vm67_vm3, %v58_v21, 0.0 }
  0xc5   :  { %69 = vadd.xlane.f32.xlu0 %v68_v22 }
 0x152   :  { %v70_v24 = vpop.xlane.xlu0 %69 }
 0x153   :  { %v71_v25 = vrot.slane %v70_v24, 4 }
 0x155   :  { %v72_v26 = vadd.f32 %v71_v25, %v70_v24 }
 0x157   :  { %v73_v27 = vrot.slane %v72_v26, 2 }
 0x159   :  { %v74_v28 = vadd.f32 %v73_v27, %v72_v26 }
 0x15b   :  { %v75_v29 = vrot.slane %v74_v28, 1 }
 0x15d   :  { %v76_v30 = vadd.f32 %v75_v29, %v74_v28 }
 0x15f   :  { %103 = vpush %v76_v30 }
 0x190   :  { %s104_s0 = spop %103 }
 0x191   :  { %v78_v32 = vstv %s104_s0 }
 0x192   :  { %v79_v33 = vadd.f32 %v78_v32, %v66_v31 }
 0x194   :  { %81 = vst.msk [vmem:[#allocation5] sm:$0x1] %vm31_vm4, %v79_v33 }
 0x19b   :  { %v85_v34 = vld [vmem:[#allocation5] sm:$0x1] }
 0x19c   :  { %v86_v35 = vmul.f32 0.125, %v85_v34 }
 0x19e   :  { %87 = vst.msk [vmem:[#allocation5] sm:$0x1] %vm31_vm4, %v86_v35 }
 0x19f   :  { %143 = shalt.err (!%p140_p12)
}
 0x1a0   :  { %s144_s5 = scalar_lea.hbm %s217_s3, 16 }
 0x1a1   :  { %p145_p13 = scmp.ne.s32.totalorder %s217_s3, %s144_s5  ;;  %p148_p0 = scmp.lt.u32.totalorder %s144_s5, %s217_s3 }
 0x1a3   :  { %p150_p1 = pnand %p148_p0, %p145_p13 }
 0x1a5   :  { %153 = shalt.err (!%p150_p1)
}
 0x1a6   :  { %97 = dma.vmem_to_hbm [thread:$0]  %s95_s2, 16, %s217_s3, [#allocation4]  }
 0x1a7   :  { %156 = dma.done.wait [#allocation4], 16  }
 0x1a8   :  { %157 = vsyncadd [#allocation4], 4294967280 }
 0x1a9   :  { %101 = vsyncpa [#allocation3], 1 }
 0x1aa   :  { %102 = vsyncpa [#allocation4], 1 }

</bundles_post_ra>
